<compile_context>
chip_gen: v6e
topology: v6e:2x2x1
jax: 0.10.0
libtpu: 0.0.40
codegen_flags: <defaults>
</compile_context>

<pallas_src>
import math

import jax
import jax.numpy as jnp
from jax import lax
from jax.experimental import pallas as pl
from jax.experimental.pallas import tpu as pltpu


# --------------------------------- kernels ------------------------------------------
def _noisy_linear_fused_kernel(x_ref, mu_wt_ref, sig_wt_ref, eps_in_ref, eps_out_ref,
                               bias_ref, o_ref, acc_ref):
    """Large-batch path: rebuild the effective weight tile on the VPU, one matmul."""
    k = pl.program_id(2)

    @pl.when(k == 0)
    def _():
        acc_ref[...] = jnp.zeros_like(acc_ref)

    # Factorized noise rebuilt per tile in the streamed dtype (bf16 by default).
    eps_tile = eps_in_ref[...] * eps_out_ref[...]            # (tk,1)*(1,tn) -> (tk,tn)
    w = mu_wt_ref[...] + sig_wt_ref[...] * eps_tile          # effective K-major tile

    acc_ref[...] += jnp.dot(x_ref[...], w, preferred_element_type=jnp.float32)

    @pl.when(k == pl.num_programs(2) - 1)
    def _():
        o_ref[...] = (acc_ref[...] + bias_ref[...]).astype(o_ref.dtype)   # bias is f32


def _noisy_linear_two_matmul_kernel(x_ref, mu_wt_ref, sig_wt_ref, eps_in_ref, eps_out_ref,
                                    bias_ref, o_ref, acc_ref):
    """Small-batch path: two matmuls, no per-weight-element fuse.
    acc += x @ mu_wt + eps_out * ((x * eps_in) @ sig_wt)."""
    k = pl.program_id(2)

    @pl.when(k == 0)
    def _():
        acc_ref[...] = jnp.zeros_like(acc_ref)

    x = x_ref[...]
    x_noisy = x * eps_in_ref[...]                            # (tb,tk) * (1,tk)
    mu_part = jnp.dot(x, mu_wt_ref[...], preferred_element_type=jnp.float32)
    sig_part = jnp.dot(x_noisy, sig_wt_ref[...], preferred_element_type=jnp.float32)
    acc_ref[...] += mu_part + eps_out_ref[...].astype(jnp.float32) * sig_part

    @pl.when(k == pl.num_programs(2) - 1)
    def _():
        o_ref[...] = (acc_ref[...] + bias_ref[...]).astype(o_ref.dtype)   # bias is f32


# --------------------------------- helpers ------------------------------------------
def _round_up(x, m):
    return ((x + m - 1) // m) * m


def _pick_tile(dim_p, candidates, max_pad_frac=0.125):
    """Pick the largest tile with padding overhead <= max_pad_frac (else smallest)."""
    for t in candidates:
        padded = _round_up(dim_p, t)
        if dim_p >= t and (padded - dim_p) <= max_pad_frac * dim_p:
            return t, padded
    t = candidates[-1]
    return t, _round_up(dim_p, t)


# ------------------------------ prepare (cold path) ---------------------------------
def prepare_noisy_linear_params(mu_w, sigma_w, eps_in, eps_out, mu_b, sigma_b,
                                *, compute_dtype=jnp.bfloat16):
    """One-time: K-major ([in,out]) layout, tile padding, dtype cast, bias precompute.
    In a real model the parameters live in this form so none of this hits the hot path."""
    out_dim, in_dim = mu_w.shape
    in_p128 = _round_up(in_dim, 128)
    out_p128 = _round_up(out_dim, 128)
    tk, in_p = _pick_tile(in_p128, (1024, 512, 256, 128))
    tn, out_p = _pick_tile(out_p128, (512, 256, 128))

    f32 = jnp.float32
    pad_w = ((0, in_p - in_dim), (0, out_p - out_dim))
    mu_wt = jnp.pad(mu_w.astype(f32).T, pad_w).astype(compute_dtype)
    sig_wt = jnp.pad(sigma_w.astype(f32).T, pad_w).astype(compute_dtype)
    eps_in_p = jnp.pad(eps_in.astype(f32), (0, in_p - in_dim)).astype(compute_dtype)
    eps_out_row = (jnp.pad(eps_out.astype(f32), (0, out_p - out_dim))
                   .astype(compute_dtype).reshape(1, out_p))
    # epsilon_bias == eps_out (module semantics); bias precomputed once in f32.
    bias = mu_b.astype(f32) + sigma_b.astype(f32) * eps_out.astype(f32)
    bias_row = jnp.pad(bias, (0, out_p - out_dim)).reshape(1, out_p)

    return dict(in_dim=in_dim, out_dim=out_dim, in_p=in_p, out_p=out_p, tk=tk, tn=tn,
                compute_dtype=compute_dtype, mu_wt=mu_wt, sig_wt=sig_wt,
                eps_in=eps_in_p, eps_out_row=eps_out_row, bias_row=bias_row)


# ------------------------------ forward (hot path) ----------------------------------
def noisy_linear_forward(x, params, *, out_dtype=None):
    """x: [B, in_dim]. Returns [B, out_dim]."""
    p = params
    B, in_dim = x.shape
    assert in_dim == p["in_dim"], (in_dim, p["in_dim"])
    out_dtype = out_dtype if out_dtype is not None else x.dtype
    in_p, out_p, tk, tn = p["in_p"], p["out_p"], p["tk"], p["tn"]
    cdt = p["compute_dtype"]

    # Batch tiling: any multiple of 8 up to 512 -> no 2x zero-row padding for ragged B.
    B_p = _round_up(B, 8)
    n_b = -(-B_p // 512)
    tb = _round_up(-(-B_p // n_b), 8)
    B_p = n_b * tb

    # v7x megacore: guarantee >= 2 tiles on the parallel (batch x out) grid axes.
    while n_b * (out_p // tn) < 2 and tn > 128:
        tn //= 2
    n_n = out_p // tn
    n_k = in_p // tk
    grid = (n_b, n_n, n_k)

    xp = jnp.pad(x, ((0, B_p - B), (0, in_p - in_dim))).astype(cdt)

    two_mm = tb <= 64
    if two_mm:
        kernel = _noisy_linear_two_matmul_kernel
        eps_in_arg = p["eps_in"].reshape(1, in_p)                      # lane-dense row
        eps_in_spec = pl.BlockSpec((1, tk), lambda b, n, k: (0, k))
    else:
        kernel = _noisy_linear_fused_kernel
        eps_in_arg = p["eps_in"].reshape(in_p, 1)                      # column for fuse
        eps_in_spec = pl.BlockSpec((tk, 1), lambda b, n, k: (k, 0))

    csz = jnp.dtype(cdt).itemsize
    osz = jnp.dtype(out_dtype).itemsize
    flops = (4 if two_mm else 2) * B_p * in_p * out_p
    bytes_accessed = int(B_p * in_p * n_n * csz            # x re-streamed per out tile
                         + 2 * in_p * out_p * n_b * csz    # weight streams per batch tile
                         + B_p * out_p * osz               # y
                         + (in_p + out_p) * csz + out_p * 4)

    # Explicit VMEM budget (double-buffered inputs/outputs + f32 accumulator).
    vmem_need = ((2 * tb * tk + 4 * tk * tn + 2 * max(tk, tn) + 2 * tn) * csz
                 + 2 * tn * 4 + 2 * tb * tn * osz + tb * tn * 4)
    vmem_limit = int(min(max(2 * vmem_need, 16 * 1024 * 1024), 48 * 1024 * 1024))

    out = pl.pallas_call(
        kernel,
        out_shape=jax.ShapeDtypeStruct((B_p, out_p), out_dtype),
        grid=grid,
        in_specs=[
            pl.BlockSpec((tb, tk), lambda b, n, k: (b, k)),     # x
            pl.BlockSpec((tk, tn), lambda b, n, k: (k, n)),     # mu_w  (K-major)
            pl.BlockSpec((tk, tn), lambda b, n, k: (k, n)),     # sig_w (K-major)
            eps_in_spec,                                        # eps_in (row or column)
            pl.BlockSpec((1, tn), lambda b, n, k: (0, n)),      # eps_out row (k-invariant)
            pl.BlockSpec((1, tn), lambda b, n, k: (0, n)),      # precomputed bias (f32)
        ],
        out_specs=pl.BlockSpec((tb, tn), lambda b, n, k: (b, n)),
        scratch_shapes=[pltpu.VMEM((tb, tn), jnp.float32)],
        compiler_params=pltpu.CompilerParams(
            dimension_semantics=("parallel", "parallel", "arbitrary"),
            vmem_limit_bytes=vmem_limit),
        cost_estimate=pl.CostEstimate(flops=flops, transcendentals=0,
                                      bytes_accessed=bytes_accessed),
    )(xp, p["mu_wt"], p["sig_wt"], eps_in_arg, p["eps_out_row"], p["bias_row"])

    return out[:B, :p["out_dim"]]


def noisy_linear(x, mu_w, sigma_w, eps_in, eps_out, mu_b, sigma_b,
                 *, compute_dtype=jnp.bfloat16, out_dtype=None):
    """Convenience one-shot entry (prepare + forward). For repeated calls, call
    prepare_noisy_linear_params() once and noisy_linear_forward() per step."""
    params = prepare_noisy_linear_params(mu_w, sigma_w, eps_in, eps_out, mu_b, sigma_b,
                                         compute_dtype=compute_dtype)
    return noisy_linear_forward(x, params, out_dtype=out_dtype)


# ---------------- parameter init mirroring NoisyLinear.reset_parameters() -------------
def _scale_noise(key, size):
    # PyTorch: x.sign() * x.abs().sqrt(), x ~ N(0, 1)
    x = jax.random.normal(key, (size,), dtype=jnp.float32)
    return jnp.sign(x) * jnp.sqrt(jnp.abs(x))


def init_noisy_linear_params(key, input_dim, output_dim, sigma_zero=0.5):
    k_mw, k_mb, k_ein, k_eout = jax.random.split(key, 4)
    mu_std = 1.0 / math.sqrt(input_dim)
    mu_weight = mu_std * jax.random.normal(k_mw, (output_dim, input_dim), jnp.float32)
    mu_bias = mu_std * jax.random.normal(k_mb, (output_dim,), jnp.float32)
    init_sigma = sigma_zero / math.sqrt(input_dim)
    sigma_weight = jnp.full((output_dim, input_dim), init_sigma, jnp.float32)
    sigma_bias = jnp.full((output_dim,), init_sigma, jnp.float32)
    # sample_noise(): epsilon_weight = outer(eps_out, eps_in); epsilon_bias = eps_out
    eps_in = _scale_noise(k_ein, input_dim)
    eps_out = _scale_noise(k_eout, output_dim)
    return mu_weight, sigma_weight, eps_in, eps_out, mu_bias, sigma_bias


def _reference(x, mu_w, sigma_w, eps_in, eps_out, mu_b, sigma_b):
    w_eff = mu_w + sigma_w * jnp.outer(eps_out, eps_in)
    b_eff = mu_b + sigma_b * eps_out
    return jnp.matmul(x, w_eff.T, precision=lax.Precision.HIGHEST) + b_eff


if __name__ == "__main__":
    key = jax.random.PRNGKey(0)
    keys = jax.random.split(key, 6)

    # Case 1: module-scale shapes (small RL batch) -> two-matmul factorized path.
    batch, input_dim, output_dim = 8, 32, 64
    params = init_noisy_linear_params(keys[0], input_dim, output_dim, sigma_zero=0.5)
    x = jax.random.normal(keys[1], (batch, input_dim), dtype=jnp.float32)
    y_ref = _reference(x, *params)

    # f32-streamed variant (tight-tolerance correctness check).
    prepared_f32 = prepare_noisy_linear_params(*params, compute_dtype=jnp.float32)
    y_f32 = jax.block_until_ready(noisy_linear_forward(x, prepared_f32))
    assert y_f32.shape == (batch, output_dim)
    assert jnp.allclose(y_f32, y_ref, atol=1e-4, rtol=1e-4)

    # Default path: bf16-streamed weights + bf16 MXU, f32 accumulation.
    prepared = prepare_noisy_linear_params(*params)
    y_bf16 = jax.block_until_ready(noisy_linear_forward(x, prepared))
    assert jnp.allclose(y_bf16, y_ref, atol=5e-2, rtol=5e-2)

    # Case 2: ragged dims (padding) + multi-step K reduction, small batch.
    b2, i2, o2 = 10, 300, 200
    params2 = init_noisy_linear_params(keys[2], i2, o2, sigma_zero=0.5)
    x2 = jax.random.normal(keys[3], (b2, i2), dtype=jnp.float32)
    y2 = jax.block_until_ready(noisy_linear(x2, *params2))
    y2_ref = _reference(x2, *params2)
    assert y2.shape == (b2, o2)
    assert jnp.allclose(y2, y2_ref, atol=5e-2, rtol=5e-2)

    # Case 3: larger batch -> fused-weight path, multiple n/k tiles.
    b3, i3, o3 = 136, 640, 384
    params3 = init_noisy_linear_params(keys[4], i3, o3, sigma_zero=0.5)
    x3 = jax.random.normal(keys[5], (b3, i3), dtype=jnp.float32)
    y3 = jax.block_until_ready(noisy_linear(x3, *params3))
    y3_ref = _reference(x3, *params3)
    assert y3.shape == (b3, o3)
    assert jnp.allclose(y3, y3_ref, atol=5e-2, rtol=5e-2)

    print("KERNEL_OK")
</pallas_src>

<mosaic_0001>
module attributes {stable_mosaic.version = 11 : i64} {
  func.func @_noisy_linear_two_matmul_kernel(%arg0: i32, %arg1: i32, %arg2: i32, %arg3: memref<8x128xf32, #tpu.memory_space<vmem>>, %arg4: memref<128x128xf32, #tpu.memory_space<vmem>>, %arg5: memref<128x128xf32, #tpu.memory_space<vmem>>, %arg6: memref<1x128xf32, #tpu.memory_space<vmem>>, %arg7: memref<1x128xf32, #tpu.memory_space<vmem>>, %arg8: memref<1x128xf32, #tpu.memory_space<vmem>>, %arg9: memref<8x128xf32, #tpu.memory_space<vmem>>, %arg10: memref<8x128xf32, #tpu.memory_space<vmem>>) attributes {dimension_semantics = [#tpu.dimension_semantics<parallel>, #tpu.dimension_semantics<parallel>, #tpu.dimension_semantics<arbitrary>], iteration_bounds = array<i64: 1, 1, 1>, scalar_prefetch = 0 : i64, scratch_operands = 1 : i64, tpu.core_type = #tpu.core_type<tc>, window_params = [{transform_indices = @transform_0, window_bounds = array<i64: 8, 128>}, {transform_indices = @transform_1, window_bounds = array<i64: 128, 128>}, {transform_indices = @transform_2, window_bounds = array<i64: 128, 128>}, {transform_indices = @transform_3, window_bounds = array<i64: 1, 128>}, {transform_indices = @transform_4, window_bounds = array<i64: 1, 128>}, {transform_indices = @transform_5, window_bounds = array<i64: 1, 128>}, {transform_indices = @transform_6, window_bounds = array<i64: 8, 128>}]} {
    %c0_i32 = arith.constant 0 : i32
    %0 = arith.cmpi eq, %arg2, %c0_i32 : i32
    %1 = arith.extui %0 : i1 to i32
    %c0_i32_0 = arith.constant 0 : i32
    %2 = arith.cmpi ne, %1, %c0_i32_0 : i32
    scf.if %2 {
      %cst_17 = arith.constant 0.000000e+00 : f32
      %21 = vector.broadcast %cst_17 : f32 to vector<8x128xf32>
      %c0_18 = arith.constant 0 : index
      %c0_19 = arith.constant 0 : index
      %22 = vector.load %arg10[%c0_18, %c0_19] : memref<8x128xf32, #tpu.memory_space<vmem>>, vector<8x128xf32>
      tpu.vector_store %arg10[%c0_18, %c0_19], %21 {strides = array<i32>} : memref<8x128xf32, #tpu.memory_space<vmem>>, vector<8x128xf32>,
    } else {
    }
    %c0 = arith.constant 0 : index
    %c0_1 = arith.constant 0 : index
    %3 = vector.load %arg3[%c0, %c0_1] : memref<8x128xf32, #tpu.memory_space<vmem>>, vector<8x128xf32>
    %c0_2 = arith.constant 0 : index
    %c0_3 = arith.constant 0 : index
    %4 = vector.load %arg6[%c0_2, %c0_3] : memref<1x128xf32, #tpu.memory_space<vmem>>, vector<1x128xf32>
    %5 = vector.broadcast %4 : vector<1x128xf32> to vector<8x128xf32>
    %6 = arith.mulf %3, %5 : vector<8x128xf32>
    %c0_4 = arith.constant 0 : index
    %c0_5 = arith.constant 0 : index
    %7 = vector.load %arg4[%c0_4, %c0_5] : memref<128x128xf32, #tpu.memory_space<vmem>>, vector<128x128xf32>
    %cst = arith.constant dense<0.000000e+00> : vector<8x128xf32>
    %8 = tpu.matmul %3, %7, %cst {dimension_numbers = #tpu.dot_dimension_numbers<[1], [0], [0], [1], [0, 0, 1, 1], [], []>} : vector<8x128xf32>, vector<128x128xf32>, vector<8x128xf32> -> vector<8x128xf32>
    %c0_6 = arith.constant 0 : index
    %c0_7 = arith.constant 0 : index
    %9 = vector.load %arg5[%c0_6, %c0_7] : memref<128x128xf32, #tpu.memory_space<vmem>>, vector<128x128xf32>
    %cst_8 = arith.constant dense<0.000000e+00> : vector<8x128xf32>
    %10 = tpu.matmul %6, %9, %cst_8 {dimension_numbers = #tpu.dot_dimension_numbers<[1], [0], [0], [1], [0, 0, 1, 1], [], []>} : vector<8x128xf32>, vector<128x128xf32>, vector<8x128xf32> -> vector<8x128xf32>
    %c0_9 = arith.constant 0 : index
    %c0_10 = arith.constant 0 : index
    %11 = vector.load %arg10[%c0_9, %c0_10] : memref<8x128xf32, #tpu.memory_space<vmem>>, vector<8x128xf32>
    %c0_11 = arith.constant 0 : index
    %c0_12 = arith.constant 0 : index
    %12 = vector.load %arg7[%c0_11, %c0_12] : memref<1x128xf32, #tpu.memory_space<vmem>>, vector<1x128xf32>
    %13 = vector.broadcast %12 : vector<1x128xf32> to vector<8x128xf32>
    %14 = arith.mulf %13, %10 : vector<8x128xf32>
    %15 = arith.addf %8, %14 : vector<8x128xf32>
    %16 = arith.addf %11, %15 : vector<8x128xf32>
    %c0_13 = arith.constant 0 : index
    %c0_14 = arith.constant 0 : index
    %17 = vector.load %arg10[%c0_13, %c0_14] : memref<8x128xf32, #tpu.memory_space<vmem>>, vector<8x128xf32>
    tpu.vector_store %arg10[%c0_13, %c0_14], %16 {strides = array<i32>} : memref<8x128xf32, #tpu.memory_space<vmem>>, vector<8x128xf32>,
    %c0_i32_15 = arith.constant 0 : i32
    %18 = arith.cmpi eq, %arg2, %c0_i32_15 : i32
    %19 = arith.extui %18 : i1 to i32
    %c0_i32_16 = arith.constant 0 : i32
    %20 = arith.cmpi ne, %19, %c0_i32_16 : i32
    scf.if %20 {
      %c0_17 = arith.constant 0 : index
      %c0_18 = arith.constant 0 : index
      %21 = vector.load %arg10[%c0_17, %c0_18] : memref<8x128xf32, #tpu.memory_space<vmem>>, vector<8x128xf32>
      %c0_19 = arith.constant 0 : index
      %c0_20 = arith.constant 0 : index
      %22 = vector.load %arg8[%c0_19, %c0_20] : memref<1x128xf32, #tpu.memory_space<vmem>>, vector<1x128xf32>
      %23 = vector.broadcast %22 : vector<1x128xf32> to vector<8x128xf32>
      %24 = arith.addf %21, %23 : vector<8x128xf32>
      %c0_21 = arith.constant 0 : index
      %c0_22 = arith.constant 0 : index
      %25 = vector.load %arg9[%c0_21, %c0_22] : memref<8x128xf32, #tpu.memory_space<vmem>>, vector<8x128xf32>
      tpu.vector_store %arg9[%c0_21, %c0_22], %24 {strides = array<i32>} : memref<8x128xf32, #tpu.memory_space<vmem>>, vector<8x128xf32>,
    } else {
    }
    return
  }
  func.func @transform_0(%arg0: i32, %arg1: i32, %arg2: i32) -> (i32, i32) {
    %c0_i32 = arith.constant 0 : i32
    return %arg0, %arg2 : i32, i32
  }
  func.func @transform_1(%arg0: i32, %arg1: i32, %arg2: i32) -> (i32, i32) {
    %c0_i32 = arith.constant 0 : i32
    return %arg2, %arg1 : i32, i32
  }
  func.func @transform_2(%arg0: i32, %arg1: i32, %arg2: i32) -> (i32, i32) {
    %c0_i32 = arith.constant 0 : i32
    return %arg2, %arg1 : i32, i32
  }
  func.func @transform_3(%arg0: i32, %arg1: i32, %arg2: i32) -> (i32, i32) {
    %c0_i32 = arith.constant 0 : i32
    %c0_i32_0 = arith.constant 0 : i32
    return %c0_i32, %arg2 : i32, i32
  }
  func.func @transform_4(%arg0: i32, %arg1: i32, %arg2: i32) -> (i32, i32) {
    %c0_i32 = arith.constant 0 : i32
    %c0_i32_0 = arith.constant 0 : i32
    return %c0_i32, %arg1 : i32, i32
  }
  func.func @transform_5(%arg0: i32, %arg1: i32, %arg2: i32) -> (i32, i32) {
    %c0_i32 = arith.constant 0 : i32
    %c0_i32_0 = arith.constant 0 : i32
    return %c0_i32, %arg1 : i32, i32
  }
  func.func @transform_6(%arg0: i32, %arg1: i32, %arg2: i32) -> (i32, i32) {
    %c0_i32 = arith.constant 0 : i32
    return %arg0, %arg1 : i32, i32
  }
}

</mosaic_0001>

<bundles_post_ra>
// kernel: tpu_custom_call.1
= control target key start
LH: loop header
LB: loop body
LE: loop exit
PB: predicated region body
PF: predicated region fallthrough
CT: control target
= control target key end

     0   :  { %11 = vsyncpa [#allocation4], 0  ;;  %s588_s0 = inlined_call_operand.hbm [shape: f32[8,128], index: 0, kind: input, shape index: {}]   ;;  %s589_s1 = inlined_call_operand.hbm [shape: f32[128,128], index: 1, kind: input, shape index: {}]   ;;  %s590_s2 = inlined_call_operand.hbm [shape: f32[128,128], index: 2, kind: input, shape index: {}]   ;;  %s591_s3 = inlined_call_operand.vmem [shape: f32[1,128], index: 3, kind: input, shape index: {}]   ;;  %s592_s4 = inlined_call_operand.vmem [shape: f32[1,128], index: 4, kind: input, shape index: {}]   ;;  %s593_s5 = inlined_call_operand.vmem [shape: f32[1,128], index: 5, kind: input, shape index: {}]   ;;  %s594_s6 = inlined_call_operand.hbm [shape: f32[8,128], index: 6, kind: output, shape index: {}]  }
   0x1   :  { %12 = vsyncpa [#allocation7], 0 }
   0x2   :  { %13 = vsyncpa [#allocation5], 0  ;;  %s490_s21 = smov [#allocation6]  }
   0x3   :  { %s29_s22 = sshll.u32 %s490_s21, 4  ;;  %s30_s22 = int_to_ptr.vmem [resolvable:$true] %s29_s22 }
   0x4   :  { %s412_s23 = scalar_lea.vmem %s30_s22, 2048  ;;  %p417_p1 = scmp.lt.s32.totalorder %s30_s22, %s30_s22 }
   0x5   :  { %p413_p0 = scmp.ne.s32.totalorder %s30_s22, %s412_s23  ;;  %p418_p2 = scmp.lt.s32.totalorder %s412_s23, %s412_s23 }
   0x7   :  { %p419_p3 = por %p418_p2, %p417_p1 }
   0x9   :  { %p420_p4 = pnand %p419_p3, %p413_p0 }
   0xb   :  { %423 = shalt.err (!%p420_p4)
}
   0xc   :  { %s491_s24 = smov 128   ;;  %s492_s25 = smov 8  }
   0xd   :  { %35 = dma.hbm_to_vmem [thread:$0]  %s589_s1, 2048, %s30_s22, [#allocation7], %s491_s24, %s491_s24, %s492_s25  }
   0xe   :  { %s493_s28 = smov [#allocation3]   ;;  %s494_s30 = smov [#allocation8]  }
   0xf   :  { %s20_s29 = sshll.u32 %s493_s28, 4  ;;  %s41_s7 = sshll.u32 %s494_s30, 4  ;;  %s21_s29 = int_to_ptr.vmem [resolvable:$true] %s20_s29  ;;  %s42_s7 = int_to_ptr.vmem [resolvable:$true] %s41_s7 }
  0x10   :  { %s432_s8 = scalar_lea.vmem %s21_s29, 128  ;;  %p437_p6 = scmp.lt.s32.totalorder %s21_s29, %s21_s29 }
  0x11   :  { %p433_p5 = scmp.ne.s32.totalorder %s21_s29, %s432_s8  ;;  %p438_p7 = scmp.lt.s32.totalorder %s432_s8, %s432_s8 }
  0x13   :  { %p439_p8 = por %p438_p7, %p437_p6 }
  0x15   :  { %p440_p9 = pnand %p439_p8, %p433_p5 }
  0x17   :  { %443 = shalt.err (!%p440_p9)
}
  0x18   :  { %23 = dma.hbm_to_vmem [thread:$0]  %s588_s0, 128, %s21_s29, [#allocation4]  }
  0x19   :  { %s452_s11 = scalar_lea.vmem %s42_s7, 2048  ;;  %p457_p11 = scmp.lt.s32.totalorder %s42_s7, %s42_s7 }
  0x1a   :  { %p453_p10 = scmp.ne.s32.totalorder %s42_s7, %s452_s11  ;;  %p458_p12 = scmp.lt.s32.totalorder %s452_s11, %s452_s11 }
  0x1c   :  { %p459_p13 = por %p458_p12, %p457_p11 }
  0x1e   :  { %p460_p0 = pnand %p459_p13, %p453_p10 }
  0x20   :  { %463 = shalt.err (!%p460_p0)
}
  0x21   :  { %47 = dma.hbm_to_vmem [thread:$0]  %s590_s2, 2048, %s42_s7, [#allocation7], %s491_s24, %s491_s24, %s492_s25  }
  0x22   :  { %484 = dma.done.wait [#allocation4], 128  }
  0x23   :  { %485 = vsyncadd [#allocation4], 4294967168 }
  0x24   :  { %486 = dma.done.wait [#allocation7], 4096  }
  0x25   :  { %487 = vsyncadd [#allocation7], 4294963200  ;;  %v495_v0 = vmov 0.0   ;;  %vm496_vm0 = vmmov 0   ;;  %v108_v1 = vld [vmem:[#allocation8 + $0x78] sm:$0xff]  ;;  %v107_v3 = vld [vmem:[#allocation8 + $0x70] sm:$0xff] }
  0x26   :  { %326 = vmatprep.subr.mxu0 %v495_v0  ;;  %361 = vmatprep.subr.mxu1 %v495_v0  ;;  %v92_v2 = vld [vmem:[#allocation6 + $0x78] sm:$0xff]  ;;  %v91_v4 = vld [vmem:[#allocation6 + $0x70] sm:$0xff]  ;;  %v106_v5 = vld [vmem:[#allocation8 + $0x68] sm:$0xff]  ;;  %s497_s16 = smov [#allocation9]  }
  0x27   :  { %358 = vmatprep.mubr.msk.f32.mxu0 %vm496_vm0, %v495_v0  ;;  %393 = vmatprep.mubr.msk.f32.mxu1 %vm496_vm0, %v495_v0  ;;  %v90_v6 = vld [vmem:[#allocation6 + $0x68] sm:$0xff]  ;;  %v105_v7 = vld [vmem:[#allocation8 + $0x60] sm:$0xff]  ;;  %v104_v9 = vld [vmem:[#allocation8 + $0x58] sm:$0xff]  ;;  %s279_s17 = sshll.u32 %s497_s16, 4  ;;  %s280_s17 = int_to_ptr.vmem [resolvable:$true] %s279_s17 }
  0x28   :  { %327 = vmatpush3.msra.mxu0 %v108_v1  ;;  %362 = vmatpush3.msra.mxu1 %v92_v2  ;;  %v89_v8 = vld [vmem:[#allocation6 + $0x60] sm:$0xff]  ;;  %v88_v10 = vld [vmem:[#allocation6 + $0x58] sm:$0xff]  ;;  %v103_v11 = vld [vmem:[#allocation8 + $0x50] sm:$0xff]  ;;  %s464_s18 = scalar_lea.vmem %s280_s17, 128  ;;  %p469_p2 = scmp.lt.s32.totalorder %s280_s17, %s280_s17 }
  0x29   :  { %328 = vmatprep.subr.mxu0 %v495_v0  ;;  %363 = vmatprep.subr.mxu1 %v495_v0  ;;  %v87_v12 = vld [vmem:[#allocation6 + $0x50] sm:$0xff]  ;;  %v102_v13 = vld [vmem:[#allocation8 + $0x48] sm:$0xff]  ;;  %v101_v15 = vld [vmem:[#allocation8 + $0x40] sm:$0xff]  ;;  %p465_p1 = scmp.ne.s32.totalorder %s280_s17, %s464_s18  ;;  %p470_p3 = scmp.lt.s32.totalorder %s464_s18, %s464_s18 }
  0x2a   :  { %329 = vmatpush3.msra.mxu0 %v107_v3  ;;  %364 = vmatpush3.msra.mxu1 %v91_v4  ;;  %v86_v14 = vld [vmem:[#allocation6 + $0x48] sm:$0xff]  ;;  %v85_v16 = vld [vmem:[#allocation6 + $0x40] sm:$0xff]  ;;  %v100_v17 = vld [vmem:[#allocation8 + $0x38] sm:$0xff] }
  0x2b   :  { %330 = vmatprep.subr.mxu0 %v495_v0  ;;  %365 = vmatprep.subr.mxu1 %v495_v0  ;;  %v84_v18 = vld [vmem:[#allocation6 + $0x38] sm:$0xff]  ;;  %v99_v19 = vld [vmem:[#allocation8 + $0x30] sm:$0xff]  ;;  %v98_v21 = vld [vmem:[#allocation8 + $0x28] sm:$0xff]  ;;  %p471_p4 = por %p470_p3, %p469_p2 }
  0x2c   :  { %331 = vmatpush3.msra.mxu0 %v106_v5  ;;  %366 = vmatpush3.msra.mxu1 %v90_v6  ;;  %v83_v20 = vld [vmem:[#allocation6 + $0x30] sm:$0xff]  ;;  %v82_v22 = vld [vmem:[#allocation6 + $0x28] sm:$0xff]  ;;  %v97_v23 = vld [vmem:[#allocation8 + $0x20] sm:$0xff] }
  0x2d   :  { %332 = vmatprep.subr.mxu0 %v495_v0  ;;  %367 = vmatprep.subr.mxu1 %v495_v0  ;;  %v81_v24 = vld [vmem:[#allocation6 + $0x20] sm:$0xff]  ;;  %v96_v25 = vld [vmem:[#allocation8 + $0x18] sm:$0xff]  ;;  %v95_v27 = vld [vmem:[#allocation8 + $0x10] sm:$0xff]  ;;  %p472_p5 = pnand %p471_p4, %p465_p1 }
  0x2e   :  { %333 = vmatpush3.msra.mxu0 %v105_v7  ;;  %368 = vmatpush3.msra.mxu1 %v89_v8  ;;  %v80_v26 = vld [vmem:[#allocation6 + $0x18] sm:$0xff]  ;;  %v79_v28 = vld [vmem:[#allocation6 + $0x10] sm:$0xff]  ;;  %v94_v31 = vld [vmem:[#allocation8 + $0x8] sm:$0xff] }
  0x2f   :  { %334 = vmatprep.subr.mxu0 %v495_v0  ;;  %369 = vmatprep.subr.mxu1 %v495_v0  ;;  %v68_v29 = vld [vmem:[#allocation3] sm:$0xff]  ;;  %v78_v32 = vld [vmem:[#allocation6 + $0x8] sm:$0xff]  ;;  %v93_v33 = vld [vmem:[#allocation8] sm:$0xff] }
  0x30   :  { %335 = vmatpush3.msra.mxu0 %v104_v9  ;;  %370 = vmatpush3.msra.mxu1 %v88_v10  ;;  %v289_v30 = vld [vmem:[%s591_s3] ss:$0 sm:$0xff]  ;;  %v77_v34 = vld [vmem:[#allocation6] sm:$0xff] }
  0x31   :  { %336 = vmatprep.subr.mxu0 %v495_v0  ;;  %371 = vmatprep.subr.mxu1 %v495_v0  ;;  %v76_v35 = vmul.f32 %v289_v30, %v68_v29  ;;  %v290_v36 = vld [vmem:[%s592_s4] ss:$0 sm:$0xff] }
  0x32   :  { %337 = vmatpush3.msra.mxu0 %v103_v11  ;;  %372 = vmatpush3.msra.mxu1 %v87_v12  ;;  %v291_v40 = vld [vmem:[%s593_s5] ss:$0 sm:$0xff] }
  0x33   :  { %338 = vmatprep.subr.mxu0 %v495_v0  ;;  %373 = vmatprep.subr.mxu1 %v495_v0 }
  0x34   :  { %339 = vmatpush3.msra.mxu0 %v102_v13  ;;  %374 = vmatpush3.msra.mxu1 %v86_v14 }
  0x35   :  { %340 = vmatprep.subr.mxu0 %v495_v0  ;;  %375 = vmatprep.subr.mxu1 %v495_v0 }
  0x36   :  { %341 = vmatpush3.msra.mxu0 %v101_v15  ;;  %376 = vmatpush3.msra.mxu1 %v85_v16 }
  0x37   :  { %342 = vmatprep.subr.mxu0 %v495_v0  ;;  %377 = vmatprep.subr.mxu1 %v495_v0 }
  0x38   :  { %343 = vmatpush3.msra.mxu0 %v100_v17  ;;  %378 = vmatpush3.msra.mxu1 %v84_v18 }
  0x39   :  { %344 = vmatprep.subr.mxu0 %v495_v0  ;;  %379 = vmatprep.subr.mxu1 %v495_v0 }
  0x3a   :  { %345 = vmatpush3.msra.mxu0 %v99_v19  ;;  %380 = vmatpush3.msra.mxu1 %v83_v20 }
  0x3b   :  { %346 = vmatprep.subr.mxu0 %v495_v0  ;;  %381 = vmatprep.subr.mxu1 %v495_v0 }
  0x3c   :  { %347 = vmatpush3.msra.mxu0 %v98_v21  ;;  %382 = vmatpush3.msra.mxu1 %v82_v22 }
  0x3d   :  { %348 = vmatprep.subr.mxu0 %v495_v0  ;;  %383 = vmatprep.subr.mxu1 %v495_v0 }
  0x3e   :  { %349 = vmatpush3.msra.mxu0 %v97_v23  ;;  %384 = vmatpush3.msra.mxu1 %v81_v24 }
  0x3f   :  { %350 = vmatprep.subr.mxu0 %v495_v0  ;;  %385 = vmatprep.subr.mxu1 %v495_v0 }
  0x40   :  { %351 = vmatpush3.msra.mxu0 %v96_v25  ;;  %386 = vmatpush3.msra.mxu1 %v80_v26 }
  0x41   :  { %352 = vmatprep.subr.mxu0 %v495_v0  ;;  %387 = vmatprep.subr.mxu1 %v495_v0 }
  0x42   :  { %353 = vmatpush3.msra.mxu0 %v95_v27  ;;  %388 = vmatpush3.msra.mxu1 %v79_v28 }
  0x43   :  { %354 = vmatprep.subr.mxu0 %v495_v0  ;;  %389 = vmatprep.subr.mxu1 %v495_v0 }
  0x44   :  { %355 = vmatpush3.msra.mxu0 %v94_v31  ;;  %390 = vmatpush3.msra.mxu1 %v78_v32 }
  0x45   :  { %356 = vmatprep.subr.mxu0 %v495_v0  ;;  %391 = vmatprep.subr.mxu1 %v495_v0 }
  0x46   :  { %357 = vmatpush3.msra.mxu0 %v93_v33  ;;  %392 = vmatpush3.msra.mxu1 %v77_v34 }
  0x47   :  { %359 = vmatmul.mubr.f32.vlgmr.msra.gmra.mxu0 %v76_v35  ;;  %394 = vmatmul.mubr.f32.vlgmr.msra.gmra.mxu1 %v68_v29 }
 0x107   :  { %v175_v37 = vpop.f32.mrf.mxu0  ;;  %v254_v38 = vpop.f32.mrf.mxu1 }
 0x108   :  { %v187_v39 = vmul.f32 %v290_v36, %v175_v37 }
 0x109   :  { %v360_v41 = vpop.f32.mrf.mxu0  ;;  %v395_v42 = vpop.f32.mrf.mxu1 }
 0x10a   :  { %v255_v43 = vadd.f32 %v254_v38, %v187_v39 }
 0x10c   :  { %v271_v44 = vadd.f32 %v291_v40, %v255_v43 }
 0x10e   :  { %272 = vst [vmem:[#allocation9] sm:$0xff] %v271_v44 }
 0x10f   :  { %475 = shalt.err (!%p472_p5)
}
 0x110   :  { %282 = dma.vmem_to_hbm [thread:$0]  %s280_s17, 128, %s594_s6, [#allocation5]  }
 0x111   :  { %488 = dma.done.wait [#allocation5], 128  }
 0x112   :  { %489 = vsyncadd [#allocation5], 4294967168 }
 0x113   :  { %286 = vsyncpa [#allocation4], 1 }
 0x114   :  { %287 = vsyncpa [#allocation7], 1 }
 0x115   :  { %288 = vsyncpa [#allocation5], 1 }

</bundles_post_ra>
